<compile_context>
chip_gen: v6e
topology: v6e:2x2x1
jax: 0.10.0
libtpu: 0.0.40
codegen_flags: <defaults>
</compile_context>

<pallas_src>
import jax
import jax.numpy as jnp
import numpy as np
from jax.experimental import pallas as pl
from jax.experimental.pallas import tpu as pltpu

# ----- stand-ins for the `constants` module / args (small shapes) -----
NUM_JOINTS = 8             # constants.NUM_JOINTS
NUM_CHANNELS = 4           # constants.NUM_CHANNELS
PERIOD_LENGTH = 16         # args.period_length
EMBEDDING_SIZE = 32        # args.model_args.embedding_size
PROJECTION_SIZE = 16       # args.model_args.projection_size
RESIZE_TO = PERIOD_LENGTH  # args.model_args.resize != 'linear' -> period_length
BN_EPS = 1e-5
NORM_EPS = 1e-12           # F.normalize default eps
_SQRT_HALF = 0.7071067811865476
LANE = 128                 # lane-dense pad width for E / P


# --------------------------- single fused kernel -----------------------------
def _fused_forward_kernel(x_ref, wf_ref, bias_ref, wp_ref, out_ref):
    # x_ref:    (TB, T*J*C)   flattened, BN/resize/backbone folded into wf_ref
    # wf_ref:   (T*J*C, 128)  folded weight (zero-padded past EMBEDDING_SIZE)
    # bias_ref: (2, 128)      row0 = folded backbone bias, row1 = proj bias
    # wp_ref:   (128, 128)    projection weight (zero-padded past E / P)
    # out_ref:  (TB, 256)     lanes 0:128 = representation, 128:256 = projection
    bias = bias_ref[...]

    # 1-3) BN + LearnableResize + backbone, all folded into one MXU pass
    emb = jnp.dot(x_ref[...], wf_ref[...],
                  preferred_element_type=jnp.float32) + bias[0:1, :]

    # 4) F.normalize(embedding): padded lanes are exactly zero, so the squared
    #    norm over 128 lanes equals the norm over the real E lanes.
    inv_e = jax.lax.rsqrt(
        jnp.maximum(jnp.sum(emb * emb, axis=-1, keepdims=True),
                    NORM_EPS * NORM_EPS))
    rep = emb * inv_e

    # 5) projection head: exact (erf) GELU -> Linear -> F.normalize
    g = 0.5 * emb * (1.0 + jax.lax.erf(emb * _SQRT_HALF))
    proj = jnp.dot(g, wp_ref[...],
                   preferred_element_type=jnp.float32) + bias[1:2, :]
    inv_p = jax.lax.rsqrt(
        jnp.maximum(jnp.sum(proj * proj, axis=-1, keepdims=True),
                    NORM_EPS * NORM_EPS))

    # single lane-dense (TB, 256) store -> one output DMA
    out_ref[...] = jnp.concatenate([rep, proj * inv_p], axis=-1)


# ------------------------------ forward wrapper -------------------------------
def base_model_forward(sequence, kparams, *, batch_block=128):
    """sequence: (B, period_length, NUM_JOINTS, NUM_CHANNELS) float32."""
    B, T, J, C = sequence.shape
    TF = T * J * C
    x_flat = sequence.reshape(B, TF)           # fold (T, J, C) into lanes

    if B % batch_block == 0 and B // batch_block > 1:
        # Throughput path: tile the batch axis, "parallel" lets v7x's two
        # TensorCores each take half the batch (no effect on v5e/v6e).
        out = pl.pallas_call(
            _fused_forward_kernel,
            out_shape=jax.ShapeDtypeStruct((B, 2 * LANE), jnp.float32),
            grid=(B // batch_block,),
            in_specs=[
                pl.BlockSpec((batch_block, TF), lambda i: (i, 0)),
                pl.BlockSpec((TF, LANE), lambda i: (0, 0)),
                pl.BlockSpec((2, LANE), lambda i: (0, 0)),
                pl.BlockSpec((LANE, LANE), lambda i: (0, 0)),
            ],
            out_specs=pl.BlockSpec((batch_block, 2 * LANE), lambda i: (i, 0)),
            compiler_params=pltpu.CompilerParams(
                dimension_semantics=("parallel",)),
        )(x_flat, kparams["w_fold"], kparams["bias"], kparams["w_proj"])
    else:
        # Latency path: no grid, whole arrays resident in VMEM, single launch.
        out = pl.pallas_call(
            _fused_forward_kernel,
            out_shape=jax.ShapeDtypeStruct((B, 2 * LANE), jnp.float32),
            in_specs=[
                pl.BlockSpec(memory_space=pltpu.MemorySpace.VMEM),
                pl.BlockSpec(memory_space=pltpu.MemorySpace.VMEM),
                pl.BlockSpec(memory_space=pltpu.MemorySpace.VMEM),
                pl.BlockSpec(memory_space=pltpu.MemorySpace.VMEM),
            ],
            out_specs=pl.BlockSpec(memory_space=pltpu.MemorySpace.VMEM),
        )(x_flat, kparams["w_fold"], kparams["bias"], kparams["w_proj"])

    return {"representation": out[:, :EMBEDDING_SIZE],
            "projection": out[:, LANE:LANE + PROJECTION_SIZE]}


# ------------------------------- param init -----------------------------------
def init_params(key):
    ks = jax.random.split(key, 8)
    C = NUM_CHANNELS
    Fdim = RESIZE_TO * NUM_JOINTS * NUM_CHANNELS

    # BatchNorm2d params / running stats (deterministic, non-trivial)
    gamma = 1.0 + 0.1 * jax.random.normal(ks[0], (C,), jnp.float32)
    beta = 0.1 * jax.random.normal(ks[1], (C,), jnp.float32)
    rmean = 0.05 * jax.random.normal(ks[2], (C,), jnp.float32)
    rvar = 1.0 + 0.1 * jax.random.uniform(ks[3], (C,), jnp.float32)

    # TODO(synk): LearnableResize is an external module; modeled as a learnable
    # linear map over the time axis, initialized near identity.
    w_resize = (jnp.eye(RESIZE_TO, PERIOD_LENGTH, dtype=jnp.float32)
                + 0.02 * jax.random.normal(ks[4], (RESIZE_TO, PERIOD_LENGTH),
                                           jnp.float32))

    # TODO(synk): BaseModel.__init__ leaves self.model = None (set by subclasses);
    # deterministic flatten+Linear backbone stand-in (flatten order (t2, j, c)).
    lim1 = 1.0 / jnp.sqrt(Fdim)
    w_backbone = jax.random.uniform(ks[5], (Fdim, EMBEDDING_SIZE), jnp.float32,
                                    -lim1, lim1)
    b_backbone = jnp.zeros((1, EMBEDDING_SIZE), jnp.float32)

    limp = 1.0 / jnp.sqrt(EMBEDDING_SIZE)
    w_proj = jax.random.uniform(ks[6], (EMBEDDING_SIZE, PROJECTION_SIZE),
                                jnp.float32, -limp, limp)
    b_proj = jax.random.uniform(ks[7], (1, PROJECTION_SIZE), jnp.float32,
                                -limp, limp)

    return {
        "bn": (gamma, beta, rmean, rvar),
        "w_resize": w_resize,
        "w_backbone": w_backbone,
        "b_backbone": b_backbone,
        "w_proj": w_proj,
        "b_proj": b_proj,
    }


def prepare_kernel_params(params):
    """One-time (eval-mode) fold: BN scale/shift + resize + backbone -> w_fold/b_fold.

    Must be re-run after any parameter update (assumes frozen weights).
    """
    T, T2, J, C = PERIOD_LENGTH, RESIZE_TO, NUM_JOINTS, NUM_CHANNELS
    F_in = J * C
    E, P = EMBEDDING_SIZE, PROJECTION_SIZE
    assert E <= LANE and P <= LANE

    # eval-mode BatchNorm2d folded into per-channel scale/shift, tiled to the
    # (t, j, c) flattening (c fastest).
    gamma, beta, rmean, rvar = params["bn"]
    scale_c = gamma / jnp.sqrt(rvar + BN_EPS)
    shift_c = beta - rmean * scale_c
    scale = jnp.tile(scale_c, (T * J,))                         # (T*F,)
    shift = jnp.tile(shift_c, (T * J,))                         # (T*F,)

    # M = kron(W_resize, I_F).T @ W_backbone, computed without materializing
    # the 1 MiB kron:  M[t*F+f, e] = sum_p W_resize[p, t] * W_b[p*F+f, e]
    wb3 = params["w_backbone"].reshape(T2, F_in, E)
    M = jnp.einsum('pt,pfe->tfe', params["w_resize"], wb3).reshape(T * F_in, E)

    # emb = (x*scale + shift) @ M + b_b  ==  x @ (scale[:,None]*M) + (shift@M + b_b)
    w_fold_small = scale[:, None] * M                           # (T*F, E)
    b_fold = shift @ M + params["b_backbone"].reshape(-1)       # (E,)

    # lane-dense (zero-padded to 128) weights & biases -> unmasked vst stores
    w_fold = jnp.zeros((T * F_in, LANE), jnp.float32).at[:, :E].set(w_fold_small)
    wp = jnp.zeros((LANE, LANE), jnp.float32).at[:E, :P].set(params["w_proj"])
    bias = jnp.zeros((2, LANE), jnp.float32)
    bias = bias.at[0, :E].set(b_fold)
    bias = bias.at[1, :P].set(params["b_proj"].reshape(-1))

    return {"w_fold": w_fold, "bias": bias, "w_proj": wp}


# ------------------------------ pure-JAX reference ----------------------------
def reference_forward(sequence, params):
    B, T, J, C = sequence.shape
    gamma, beta, rmean, rvar = params["bn"]
    x = jnp.transpose(sequence, (0, 3, 1, 2))            # b h w c -> b c h w
    xn = (x - rmean[None, :, None, None]) * (
        gamma[None, :, None, None] / jnp.sqrt(rvar[None, :, None, None] + BN_EPS)
    ) + beta[None, :, None, None]
    res = jnp.einsum('pt,bctj->bcpj', params["w_resize"], xn)     # resize over T
    feat = jnp.transpose(res, (0, 2, 3, 1)).reshape(B, -1)        # (t2, j, c) flat
    emb = feat @ params["w_backbone"] + params["b_backbone"].reshape(1, -1)
    rep = emb / jnp.maximum(jnp.linalg.norm(emb, axis=-1, keepdims=True), NORM_EPS)
    g = 0.5 * emb * (1.0 + jax.lax.erf(emb * _SQRT_HALF))
    proj = g @ params["w_proj"] + params["b_proj"].reshape(1, -1)
    proj = proj / jnp.maximum(jnp.linalg.norm(proj, axis=-1, keepdims=True),
                              NORM_EPS)
    return rep, proj


if __name__ == "__main__":
    key = jax.random.PRNGKey(0)
    pkey, xkey, bkey = jax.random.split(key, 3)
    params = init_params(pkey)
    kparams = prepare_kernel_params(params)

    # --- small batch (B=2): latency path, no grid ---
    x = jax.random.normal(xkey, (2, PERIOD_LENGTH, NUM_JOINTS, NUM_CHANNELS),
                          jnp.float32)
    out = base_model_forward(x, kparams)
    jax.block_until_ready(out)
    assert out["representation"].shape == (2, EMBEDDING_SIZE)
    assert out["projection"].shape == (2, PROJECTION_SIZE)

    rep_ref, proj_ref = reference_forward(x, params)
    np.testing.assert_allclose(np.asarray(out["representation"]),
                               np.asarray(rep_ref), rtol=2e-3, atol=1e-3)
    np.testing.assert_allclose(np.asarray(out["projection"]),
                               np.asarray(proj_ref), rtol=2e-3, atol=1e-3)

    # --- large batch (B=256): throughput path, batch-tiled + parallel grid ---
    xb = jax.random.normal(bkey, (256, PERIOD_LENGTH, NUM_JOINTS, NUM_CHANNELS),
                           jnp.float32)
    out_b = base_model_forward(xb, kparams)
    jax.block_until_ready(out_b)
    assert out_b["representation"].shape == (256, EMBEDDING_SIZE)
    assert out_b["projection"].shape == (256, PROJECTION_SIZE)

    rep_rb, proj_rb = reference_forward(xb, params)
    np.testing.assert_allclose(np.asarray(out_b["representation"]),
                               np.asarray(rep_rb), rtol=2e-3, atol=1e-3)
    np.testing.assert_allclose(np.asarray(out_b["projection"]),
                               np.asarray(proj_rb), rtol=2e-3, atol=1e-3)

    print("KERNEL_OK")
</pallas_src>

<mosaic_0001>
module attributes {stable_mosaic.version = 11 : i64} {
  func.func @_fused_forward_kernel(%arg0: memref<2x512xf32, #tpu.memory_space<vmem>>, %arg1: memref<512x128xf32, #tpu.memory_space<vmem>>, %arg2: memref<2x128xf32, #tpu.memory_space<vmem>>, %arg3: memref<128x128xf32, #tpu.memory_space<vmem>>, %arg4: memref<2x256xf32, #tpu.memory_space<vmem>>) attributes {dimension_semantics = [], scalar_prefetch = 0 : i64, scratch_operands = 0 : i64, tpu.core_type = #tpu.core_type<tc>} {
    %c0 = arith.constant 0 : index
    %c0_0 = arith.constant 0 : index
    %0 = vector.load %arg2[%c0, %c0_0] : memref<2x128xf32, #tpu.memory_space<vmem>>, vector<2x128xf32>
    %c0_1 = arith.constant 0 : index
    %c0_2 = arith.constant 0 : index
    %1 = vector.load %arg0[%c0_1, %c0_2] : memref<2x512xf32, #tpu.memory_space<vmem>>, vector<2x512xf32>
    %c0_3 = arith.constant 0 : index
    %c0_4 = arith.constant 0 : index
    %2 = vector.load %arg1[%c0_3, %c0_4] : memref<512x128xf32, #tpu.memory_space<vmem>>, vector<512x128xf32>
    %cst = arith.constant dense<0.000000e+00> : vector<2x128xf32>
    %3 = tpu.matmul %1, %2, %cst {dimension_numbers = #tpu.dot_dimension_numbers<[1], [0], [0], [1], [0, 0, 1, 1], [], []>} : vector<2x512xf32>, vector<512x128xf32>, vector<2x128xf32> -> vector<2x128xf32>
    %4 = vector.extract_strided_slice %0 {offsets = [0, 0], sizes = [1, 128], strides = [1, 1]} : vector<2x128xf32> to vector<1x128xf32>
    %5 = vector.broadcast %4 : vector<1x128xf32> to vector<2x128xf32>
    %6 = arith.addf %3, %5 : vector<2x128xf32>
    %7 = arith.mulf %6, %6 : vector<2x128xf32>
    %cst_5 = arith.constant dense<0.000000e+00> : vector<2xf32>
    %8 = vector.multi_reduction <add>, %7, %cst_5 [1] : vector<2x128xf32> to vector<2xf32>
    %9 = vector.shape_cast %8 : vector<2xf32> to vector<2x1xf32>
    %cst_6 = arith.constant 1.000000e-24 : f32
    %10 = vector.broadcast %cst_6 : f32 to vector<2x1xf32>
    %11 = arith.maximumf %9, %10 : vector<2x1xf32>
    %12 = math.rsqrt %11 : vector<2x1xf32>
    %13 = vector.broadcast %12 : vector<2x1xf32> to vector<2x128xf32>
    %14 = arith.mulf %6, %13 : vector<2x128xf32>
    %cst_7 = arith.constant 5.000000e-01 : f32
    %15 = vector.broadcast %cst_7 : f32 to vector<2x128xf32>
    %16 = arith.mulf %15, %6 : vector<2x128xf32>
    %cst_8 = arith.constant 0.707106769 : f32
    %17 = vector.broadcast %cst_8 : f32 to vector<2x128xf32>
    %18 = arith.mulf %6, %17 : vector<2x128xf32>
    %19 = math.erf %18 : vector<2x128xf32>
    %cst_9 = arith.constant 1.000000e+00 : f32
    %20 = vector.broadcast %cst_9 : f32 to vector<2x128xf32>
    %21 = arith.addf %20, %19 : vector<2x128xf32>
    %22 = arith.mulf %16, %21 : vector<2x128xf32>
    %c0_10 = arith.constant 0 : index
    %c0_11 = arith.constant 0 : index
    %23 = vector.load %arg3[%c0_10, %c0_11] : memref<128x128xf32, #tpu.memory_space<vmem>>, vector<128x128xf32>
    %cst_12 = arith.constant dense<0.000000e+00> : vector<2x128xf32>
    %24 = tpu.matmul %22, %23, %cst_12 {dimension_numbers = #tpu.dot_dimension_numbers<[1], [0], [0], [1], [0, 0, 1, 1], [], []>} : vector<2x128xf32>, vector<128x128xf32>, vector<2x128xf32> -> vector<2x128xf32>
    %25 = vector.extract_strided_slice %0 {offsets = [1, 0], sizes = [1, 128], strides = [1, 1]} : vector<2x128xf32> to vector<1x128xf32>
    %26 = vector.broadcast %25 : vector<1x128xf32> to vector<2x128xf32>
    %27 = arith.addf %24, %26 : vector<2x128xf32>
    %28 = arith.mulf %27, %27 : vector<2x128xf32>
    %cst_13 = arith.constant dense<0.000000e+00> : vector<2xf32>
    %29 = vector.multi_reduction <add>, %28, %cst_13 [1] : vector<2x128xf32> to vector<2xf32>
    %30 = vector.shape_cast %29 : vector<2xf32> to vector<2x1xf32>
    %cst_14 = arith.constant 1.000000e-24 : f32
    %31 = vector.broadcast %cst_14 : f32 to vector<2x1xf32>
    %32 = arith.maximumf %30, %31 : vector<2x1xf32>
    %33 = math.rsqrt %32 : vector<2x1xf32>
    %34 = vector.broadcast %33 : vector<2x1xf32> to vector<2x128xf32>
    %35 = arith.mulf %27, %34 : vector<2x128xf32>
    %36 = tpu.concatenate %14, %35 in 1 : vector<2x128xf32>, vector<2x128xf32> -> vector<2x256xf32>
    %c0_15 = arith.constant 0 : index
    %c0_16 = arith.constant 0 : index
    %37 = vector.load %arg4[%c0_15, %c0_16] : memref<2x256xf32, #tpu.memory_space<vmem>>, vector<2x256xf32>
    tpu.vector_store %arg4[%c0_15, %c0_16], %36 {strides = array<i32>} : memref<2x256xf32, #tpu.memory_space<vmem>>, vector<2x256xf32>,
    return
  }
}

</mosaic_0001>

<bundles_post_ra>
// kernel: tpu_custom_call.1
= control target key start
LH: loop header
LB: loop body
LE: loop exit
PB: predicated region body
PF: predicated region fallthrough
CT: control target
= control target key end

     0   :  { %9 = vsyncpa [#allocation3], 0  ;;  %s708_s0 = inlined_call_operand.hbm [shape: f32[2,512], index: 0, kind: input, shape index: {}]   ;;  %s709_s1 = inlined_call_operand.hbm [shape: f32[512,128], index: 1, kind: input, shape index: {}]   ;;  %s710_s2 = inlined_call_operand.vmem [shape: f32[2,128], index: 2, kind: input, shape index: {}]   ;;  %s711_s3 = inlined_call_operand.hbm [shape: f32[128,128], index: 3, kind: input, shape index: {}]   ;;  %s712_s4 = inlined_call_operand.hbm [shape: f32[2,256], index: 4, kind: output, shape index: {}]  }
   0x1   :  { %10 = vsyncpa [#allocation6], 0 }
   0x2   :  { %11 = vsyncpa [#allocation4], 0  ;;  %s652_s15 = smov [#allocation5]  }
   0x3   :  { %s27_s16 = sshll.u32 %s652_s15, 4  ;;  %s28_s16 = int_to_ptr.vmem [resolvable:$true] %s27_s16 }
   0x4   :  { %s574_s17 = scalar_lea.vmem %s28_s16, 8192  ;;  %p579_p1 = scmp.lt.s32.totalorder %s28_s16, %s28_s16 }
   0x5   :  { %p575_p0 = scmp.ne.s32.totalorder %s28_s16, %s574_s17  ;;  %p580_p2 = scmp.lt.s32.totalorder %s574_s17, %s574_s17 }
   0x7   :  { %p581_p3 = por %p580_p2, %p579_p1 }
   0x9   :  { %p582_p4 = pnand %p581_p3, %p575_p0 }
   0xb   :  { %585 = shalt.err (!%p582_p4)
}
   0xc   :  { %s653_s18 = smov 128   ;;  %s654_s19 = smov 8  }
   0xd   :  { %33 = dma.hbm_to_vmem [thread:$0]  %s709_s1, 8192, %s28_s16, [#allocation6], %s653_s18, %s653_s18, %s654_s19  }
   0xe   :  { %s655_s22 = smov [#allocation2]   ;;  %s656_s24 = smov [#allocation7]  }
   0xf   :  { %s18_s23 = sshll.u32 %s655_s22, 4  ;;  %s41_s25 = sshll.u32 %s656_s24, 4  ;;  %s19_s23 = int_to_ptr.vmem [resolvable:$true] %s18_s23  ;;  %s42_s25 = int_to_ptr.vmem [resolvable:$true] %s41_s25 }
  0x10   :  { %s594_s26 = scalar_lea.vmem %s19_s23, 128  ;;  %p599_p6 = scmp.lt.s32.totalorder %s19_s23, %s19_s23 }
  0x11   :  { %p595_p5 = scmp.ne.s32.totalorder %s19_s23, %s594_s26  ;;  %p600_p7 = scmp.lt.s32.totalorder %s594_s26, %s594_s26 }
  0x13   :  { %p601_p8 = por %p600_p7, %p599_p6 }
  0x15   :  { %p602_p9 = pnand %p601_p8, %p595_p5 }
  0x17   :  { %605 = shalt.err (!%p602_p9)
}
  0x18   :  { %21 = dma.hbm_to_vmem [thread:$0]  %s708_s0, 128, %s19_s23, [#allocation3]  }
  0x19   :  { %s614_s29 = scalar_lea.vmem %s42_s25, 2048  ;;  %p619_p11 = scmp.lt.s32.totalorder %s42_s25, %s42_s25 }
  0x1a   :  { %p615_p10 = scmp.ne.s32.totalorder %s42_s25, %s614_s29  ;;  %p620_p12 = scmp.lt.s32.totalorder %s614_s29, %s614_s29 }
  0x1c   :  { %p621_p13 = por %p620_p12, %p619_p11 }
  0x1e   :  { %p622_p0 = pnand %p621_p13, %p615_p10 }
  0x20   :  { %625 = shalt.err (!%p622_p0)
}
  0x21   :  { %47 = dma.hbm_to_vmem [thread:$0]  %s711_s3, 2048, %s42_s25, [#allocation6], %s653_s18, %s653_s18, %s654_s19  }
  0x22   :  { %646 = dma.done.wait [#allocation3], 128  }
  0x23   :  { %647 = vsyncadd [#allocation3], 4294967168 }
  0x24   :  { %648 = dma.done.wait [#allocation6], 10240  }
  0x25   :  { %649 = vsyncadd [#allocation6], 4294957056  ;;  %v90_v0 = vld [vmem:[#allocation5 + $0xf8] sm:$0xff]  ;;  %v89_v4 = vld [vmem:[#allocation5 + $0xf0] sm:$0xff]  ;;  %v123_v30 = vlaneseq  ;;  %v657_v31 = vmov 1983009808  }
  0x26   :  { %v122_v1 = vld [vmem:[#allocation5 + $0x1f8] sm:$0xff]  ;;  %428 = vmatprep.subr.mxu0 %v90_v0  ;;  %v121_v5 = vld [vmem:[#allocation5 + $0x1f0] sm:$0xff]  ;;  %v88_v8 = vld [vmem:[#allocation5 + $0xe8] sm:$0xff]  ;;  %v130_v32 = vunpack.c.l.s4 %v657_v31  ;;  %vm659_vm0 = vmmov 0   ;;  %vm290_vm1 = vcmask 1041408  }
  0x27   :  { %v74_v2 = vld [vmem:[#allocation5 + $0x78] sm:$0xff]  ;;  %463 = vmatprep.subr.mxu1 %v122_v1  ;;  %v73_v6 = vld [vmem:[#allocation5 + $0x70] sm:$0xff]  ;;  %v120_v9 = vld [vmem:[#allocation5 + $0x1e8] sm:$0xff]  ;;  %v695_v41 = vshrl.u32 %v123_v30, 7 }
  0x28   :  { %v106_v3 = vld [vmem:[#allocation5 + $0x178] sm:$0xff]  ;;  %429 = vmatpush3.msra.mxu0 %v74_v2  ;;  %v105_v7 = vld [vmem:[#allocation5 + $0x170] sm:$0xff]  ;;  %v72_v10 = vld [vmem:[#allocation5 + $0x68] sm:$0xff]  ;;  %v131_v42 = vunpack.c.0.s8 %v130_v32 }
  0x29   :  { %464 = vmatpush3.msra.mxu1 %v106_v3  ;;  %430 = vmatprep.subr.mxu0 %v89_v4  ;;  %v104_v11 = vld [vmem:[#allocation5 + $0x168] sm:$0xff]  ;;  %v87_v12 = vld [vmem:[#allocation5 + $0xe0] sm:$0xff]  ;;  %v86_v16 = vld [vmem:[#allocation5 + $0xd8] sm:$0xff] }
  0x2a   :  { %465 = vmatprep.subr.mxu1 %v121_v5  ;;  %431 = vmatpush3.msra.mxu0 %v73_v6  ;;  %v119_v13 = vld [vmem:[#allocation5 + $0x1e0] sm:$0xff]  ;;  %v118_v17 = vld [vmem:[#allocation5 + $0x1d8] sm:$0xff]  ;;  %v85_v20 = vld [vmem:[#allocation5 + $0xd0] sm:$0xff]  ;;  %v134_v51 = vsub.s32 %v131_v42, %v695_v41 }
  0x2b   :  { %466 = vmatpush3.msra.mxu1 %v105_v7  ;;  %432 = vmatprep.subr.mxu0 %v88_v8  ;;  %v71_v14 = vld [vmem:[#allocation5 + $0x60] sm:$0xff]  ;;  %v70_v18 = vld [vmem:[#allocation5 + $0x58] sm:$0xff]  ;;  %v117_v21 = vld [vmem:[#allocation5 + $0x1d0] sm:$0xff] }
  0x2c   :  { %467 = vmatprep.subr.mxu1 %v120_v9  ;;  %v103_v15 = vld [vmem:[#allocation5 + $0x160] sm:$0xff]  ;;  %433 = vmatpush3.msra.mxu0 %v72_v10  ;;  %v102_v19 = vld [vmem:[#allocation5 + $0x158] sm:$0xff]  ;;  %v69_v22 = vld [vmem:[#allocation5 + $0x50] sm:$0xff] }
  0x2d   :  { %468 = vmatpush3.msra.mxu1 %v104_v11  ;;  %434 = vmatprep.subr.mxu0 %v87_v12  ;;  %v101_v23 = vld [vmem:[#allocation5 + $0x150] sm:$0xff]  ;;  %v84_v24 = vld [vmem:[#allocation5 + $0xc8] sm:$0xff]  ;;  %v83_v28 = vld [vmem:[#allocation5 + $0xc0] sm:$0xff] }
  0x2e   :  { %469 = vmatprep.subr.mxu1 %v119_v13  ;;  %435 = vmatpush3.msra.mxu0 %v71_v14  ;;  %v116_v25 = vld [vmem:[#allocation5 + $0x1c8] sm:$0xff]  ;;  %v115_v29 = vld [vmem:[#allocation5 + $0x1c0] sm:$0xff]  ;;  %v82_v35 = vld [vmem:[#allocation5 + $0xb8] sm:$0xff]  ;;  %v658_v13 = vmov 0.0  }
  0x2f   :  { %470 = vmatpush3.msra.mxu1 %v103_v15  ;;  %436 = vmatprep.subr.mxu0 %v86_v16  ;;  %v68_v26 = vld [vmem:[#allocation5 + $0x48] sm:$0xff]  ;;  %v67_v33 = vld [vmem:[#allocation5 + $0x40] sm:$0xff]  ;;  %v114_v36 = vld [vmem:[#allocation5 + $0x1b8] sm:$0xff] }
  0x30   :  { %471 = vmatprep.subr.mxu1 %v118_v17  ;;  %437 = vmatpush3.msra.mxu0 %v70_v18  ;;  %v100_v27 = vld [vmem:[#allocation5 + $0x148] sm:$0xff]  ;;  %v99_v34 = vld [vmem:[#allocation5 + $0x140] sm:$0xff]  ;;  %v66_v37 = vld [vmem:[#allocation5 + $0x38] sm:$0xff] }
  0x31   :  { %472 = vmatpush3.msra.mxu1 %v102_v19  ;;  %438 = vmatprep.subr.mxu0 %v85_v20  ;;  %v98_v38 = vld [vmem:[#allocation5 + $0x138] sm:$0xff]  ;;  %v81_v39 = vld [vmem:[#allocation5 + $0xb0] sm:$0xff]  ;;  %v80_v45 = vld [vmem:[#allocation5 + $0xa8] sm:$0xff] }
  0x32   :  { %473 = vmatprep.subr.mxu1 %v117_v21  ;;  %439 = vmatpush3.msra.mxu0 %v69_v22  ;;  %v113_v40 = vld [vmem:[#allocation5 + $0x1b0] sm:$0xff]  ;;  %v112_v46 = vld [vmem:[#allocation5 + $0x1a8] sm:$0xff]  ;;  %v79_v49 = vld [vmem:[#allocation5 + $0xa0] sm:$0xff] }
  0x33   :  { %474 = vmatpush3.msra.mxu1 %v101_v23  ;;  %440 = vmatprep.subr.mxu0 %v84_v24  ;;  %v65_v43 = vld [vmem:[#allocation5 + $0x30] sm:$0xff]  ;;  %v64_v47 = vld [vmem:[#allocation5 + $0x28] sm:$0xff]  ;;  %v111_v50 = vld [vmem:[#allocation5 + $0x1a0] sm:$0xff] }
  0x34   :  { %475 = vmatprep.subr.mxu1 %v116_v25  ;;  %441 = vmatpush3.msra.mxu0 %v68_v26  ;;  %v97_v44 = vld [vmem:[#allocation5 + $0x130] sm:$0xff]  ;;  %v96_v48 = vld [vmem:[#allocation5 + $0x128] sm:$0xff]  ;;  %v63_v52 = vld [vmem:[#allocation5 + $0x20] sm:$0xff] }
  0x35   :  { %476 = vmatpush3.msra.mxu1 %v100_v27  ;;  %442 = vmatprep.subr.mxu0 %v83_v28  ;;  %v95_v53 = vld [vmem:[#allocation5 + $0x120] sm:$0xff]  ;;  %v58_v54 = vld [vmem:[#allocation2] sm:$0xff]  ;;  %v77_v60 = vld [vmem:[#allocation5 + $0x90] sm:$0xff] }
  0x36   :  { %477 = vmatprep.subr.mxu1 %v115_v29  ;;  %443 = vmatpush3.msra.mxu0 %v67_v33  ;;  %v78_v55 = vld [vmem:[#allocation5 + $0x98] sm:$0xff]  ;;  %v128_v57 = vcombine.high %v58_v54, %v58_v54  ;;  %v109_v61 = vld [vmem:[#allocation5 + $0x190] sm:$0xff]  ;;  %v135_v62 = vrot.slane %v58_v54, %v134_v51  ;;  %v76_v2 = vld [vmem:[#allocation5 + $0x88] sm:$0xff]  ;;  %v125_v29 = vsub.s32 0, %v695_v41 }
  0x37   :  { %478 = vmatpush3.msra.mxu1 %v99_v34  ;;  %444 = vmatprep.subr.mxu0 %v82_v35  ;;  %v110_v56 = vld [vmem:[#allocation5 + $0x198] sm:$0xff]  ;;  %v61_v63 = vld [vmem:[#allocation5 + $0x10] sm:$0xff]  ;;  %v108_v3 = vld [vmem:[#allocation5 + $0x188] sm:$0xff] }
  0x38   :  { %479 = vmatprep.subr.mxu1 %v114_v36  ;;  %445 = vmatpush3.msra.mxu0 %v66_v37  ;;  %v62_v58 = vld [vmem:[#allocation5 + $0x18] sm:$0xff]  ;;  %v93_v0 = vld [vmem:[#allocation5 + $0x110] sm:$0xff]  ;;  %v142_v1 = vrot.slane %v128_v57, %v134_v51  ;;  %v60_v4 = vld [vmem:[#allocation5 + $0x8] sm:$0xff]  ;;  %v143_v8 = vcombine.high %v135_v62, %v135_v62 }
  0x39   :  { %480 = vmatpush3.msra.mxu1 %v98_v38  ;;  %446 = vmatprep.subr.mxu0 %v81_v39  ;;  %v94_v59 = vld [vmem:[#allocation5 + $0x118] sm:$0xff]  ;;  %v92_v5 = vld [vmem:[#allocation5 + $0x108] sm:$0xff]  ;;  %v75_v6 = vld [vmem:[#allocation5 + $0x80] sm:$0xff] }
  0x3a   :  { %481 = vmatprep.subr.mxu1 %v113_v40  ;;  %447 = vmatpush3.msra.mxu0 %v65_v43  ;;  %v107_v7 = vld [vmem:[#allocation5 + $0x180] sm:$0xff]  ;;  %v144_v10 = vcombine.high %v142_v1, %v142_v1  ;;  %v317_v12 = vld [vmem:[#allocation7 + $0x78] sm:$0xff]  ;;  %v316_v14 = vld [vmem:[#allocation7 + $0x70] sm:$0xff] }
  0x3b   :  { %482 = vmatpush3.msra.mxu1 %v97_v44  ;;  %448 = vmatprep.subr.mxu0 %v80_v45  ;;  %v59_v9 = vld [vmem:[#allocation5] sm:$0xff]  ;;  %v315_v15 = vld [vmem:[#allocation7 + $0x68] sm:$0xff]  ;;  %v313_v17 = vld [vmem:[#allocation7 + $0x58] sm:$0xff] }
  0x3c   :  { %483 = vmatprep.subr.mxu1 %v112_v46  ;;  %449 = vmatpush3.msra.mxu0 %v64_v47  ;;  %v91_v11 = vld [vmem:[#allocation5 + $0x100] sm:$0xff]  ;;  %v312_v18 = vld [vmem:[#allocation7 + $0x50] sm:$0xff]  ;;  %v311_v19 = vld [vmem:[#allocation7 + $0x48] sm:$0xff] }
  0x3d   :  { %484 = vmatpush3.msra.mxu1 %v96_v48  ;;  %450 = vmatprep.subr.mxu0 %v79_v49  ;;  %v314_v16 = vld [vmem:[#allocation7 + $0x60] sm:$0xff]  ;;  %v309_v21 = vld [vmem:[#allocation7 + $0x38] sm:$0xff]  ;;  %v308_v22 = vld [vmem:[#allocation7 + $0x30] sm:$0xff]  ;;  %v320_v48 = vsub.s32 1, %v695_v41 }
  0x3e   :  { %485 = vmatprep.subr.mxu1 %v111_v50  ;;  %451 = vmatpush3.msra.mxu0 %v63_v52  ;;  %v310_v20 = vld [vmem:[#allocation7 + $0x40] sm:$0xff]  ;;  %v307_v23 = vld [vmem:[#allocation7 + $0x28] sm:$0xff]  ;;  %v305_v25 = vld [vmem:[#allocation7 + $0x18] sm:$0xff] }
  0x3f   :  { %486 = vmatpush3.msra.mxu1 %v95_v53  ;;  %452 = vmatprep.subr.mxu0 %v78_v55  ;;  %v306_v24 = vld [vmem:[#allocation7 + $0x20] sm:$0xff]  ;;  %v304_v26 = vld [vmem:[#allocation7 + $0x10] sm:$0xff]  ;;  %v303_v27 = vld [vmem:[#allocation7 + $0x8] sm:$0xff] }
  0x40   :  { %487 = vmatprep.subr.mxu1 %v110_v56  ;;  %453 = vmatpush3.msra.mxu0 %v62_v58  ;;  %v302_v28 = vld [vmem:[#allocation7] sm:$0xff]  ;;  %v57_v30 = vld [vmem:[%s710_s2] sm:$0x3]  ;;  %s660_s2 = smov [#allocation8]  }
  0x41   :  { %488 = vmatpush3.msra.mxu1 %v94_v59  ;;  %454 = vmatprep.subr.mxu0 %v77_v60  ;;  %v126_v33 = vrot.slane %v57_v30, %v125_v29  ;;  %v321_v49 = vrot.slane %v57_v30, %v320_v48  ;;  %s417_s5 = sshll.u32 %s660_s2, 4  ;;  %s418_s5 = int_to_ptr.vmem [resolvable:$true] %s417_s5 }
  0x42   :  { %489 = vmatprep.subr.mxu1 %v109_v61  ;;  %455 = vmatpush3.msra.mxu0 %v61_v63  ;;  %s626_s6 = scalar_lea.vmem %s418_s5, 64  ;;  %p631_p2 = scmp.lt.s32.totalorder %s418_s5, %s418_s5 }
  0x43   :  { %490 = vmatpush3.msra.mxu1 %v93_v0  ;;  %456 = vmatprep.subr.mxu0 %v76_v2  ;;  %p627_p1 = scmp.ne.s32.totalorder %s418_s5, %s626_s6  ;;  %p632_p3 = scmp.lt.s32.totalorder %s626_s6, %s626_s6 }
  0x44   :  { %491 = vmatprep.subr.mxu1 %v108_v3  ;;  %457 = vmatpush3.msra.mxu0 %v60_v4 }
  0x45   :  { %492 = vmatpush3.msra.mxu1 %v92_v5  ;;  %458 = vmatprep.subr.mxu0 %v75_v6  ;;  %p633_p4 = por %p632_p3, %p631_p2 }
  0x46   :  { %493 = vmatprep.subr.mxu1 %v107_v7  ;;  %459 = vmatpush3.msra.mxu0 %v59_v9 }
  0x47   :  { %213 = vmatprep.mubr.f32.mxu0 %v143_v8  ;;  %494 = vmatpush3.msra.mxu1 %v91_v11  ;;  %p634_p5 = pnand %p633_p4, %p627_p1 }
  0x48   :  { %283 = vmatprep.mubr.f32.mxu1 %v144_v10  ;;  %214 = vmatmul.mubr.f32.vlgmr.msra.gmra.mxu0 %v135_v62 }
  0x49   :  { %284 = vmatmul.mubr.f32.vlgmr.msra.gmra.mxu1 %v142_v1  ;;  %515 = vmatprep.subr.mxu0 %v658_v13 }
  0x4a   :  { %516 = vmatpush3.msra.mxu0 %v317_v12  ;;  %547 = vmatprep.mubr.msk.f32.mxu0 %vm659_vm0, %v658_v13 }
  0x4b   :  { %517 = vmatprep.subr.mxu0 %v658_v13 }
  0x4c   :  { %518 = vmatpush3.msra.mxu0 %v316_v14 }
  0x4d   :  { %519 = vmatprep.subr.mxu0 %v658_v13 }
  0x4e   :  { %520 = vmatpush3.msra.mxu0 %v315_v15 }
  0x4f   :  { %521 = vmatprep.subr.mxu0 %v658_v13 }
  0x50   :  { %522 = vmatpush3.msra.mxu0 %v314_v16 }
  0x51   :  { %523 = vmatprep.subr.mxu0 %v658_v13 }
  0x52   :  { %524 = vmatpush3.msra.mxu0 %v313_v17 }
  0x53   :  { %525 = vmatprep.subr.mxu0 %v658_v13 }
  0x54   :  { %526 = vmatpush3.msra.mxu0 %v312_v18 }
  0x55   :  { %527 = vmatprep.subr.mxu0 %v658_v13 }
  0x56   :  { %528 = vmatpush3.msra.mxu0 %v311_v19 }
  0x57   :  { %529 = vmatprep.subr.mxu0 %v658_v13 }
  0x58   :  { %530 = vmatpush3.msra.mxu0 %v310_v20 }
  0x59   :  { %531 = vmatprep.subr.mxu0 %v658_v13 }
  0x5a   :  { %532 = vmatpush3.msra.mxu0 %v309_v21 }
  0x5b   :  { %533 = vmatprep.subr.mxu0 %v658_v13 }
  0x5c   :  { %534 = vmatpush3.msra.mxu0 %v308_v22 }
  0x5d   :  { %535 = vmatprep.subr.mxu0 %v658_v13 }
  0x5e   :  { %536 = vmatpush3.msra.mxu0 %v307_v23 }
  0x5f   :  { %537 = vmatprep.subr.mxu0 %v658_v13 }
  0x60   :  { %538 = vmatpush3.msra.mxu0 %v306_v24 }
  0x61   :  { %539 = vmatprep.subr.mxu0 %v658_v13 }
  0x62   :  { %540 = vmatpush3.msra.mxu0 %v305_v25 }
  0x63   :  { %541 = vmatprep.subr.mxu0 %v658_v13 }
  0x64   :  { %542 = vmatpush3.msra.mxu0 %v304_v26 }
  0x65   :  { %543 = vmatprep.subr.mxu0 %v658_v13 }
  0x66   :  { %544 = vmatpush3.msra.mxu0 %v303_v27 }
  0x67   :  { %545 = vmatprep.subr.mxu0 %v658_v13 }
  0x68   :  { %546 = vmatpush3.msra.mxu0 %v302_v28 }
 0x108   :  { %v460_v31 = vpop.f32.mrf.mxu0 }
 0x109   :  { %v495_v32 = vpop.f32.mrf.mxu1 }
 0x10a   :  { %v461_v34 = vpop.f32.mrf.mxu0 }
 0x10b   :  { %v496_v35 = vpop.f32.mrf.mxu1  ;;  %v462_v36 = vadd.f32 %v461_v34, %v460_v31 }
 0x10c   :  { %v497_v38 = vadd.f32 %v496_v35, %v495_v32 }
 0x10d   :  { %v216_v37 = vadd.f32 %v462_v36, %v126_v33 }
 0x10f   :  { %v286_v39 = vadd.f32 %v497_v38, %v216_v37 }
 0x111   :  { %v298_v40 = vmul.f32 0.70710677, %v286_v39  ;;  %v289_v42 = vmul.f32 %v286_v39, %v286_v39  ;;  %v297_v45 = vmul.f32 0.5, %v286_v39 }
 0x113   :  { %560 = verf.f32 %v298_v40  ;;  %v291_v43 = vsel %vm290_vm1, %v289_v42, 0.0 }
 0x114   :  { %292 = vadd.xlane.f32.xlu0 %v291_v43 }
 0x120   :  { %v561_v44 = vpop.eup %560 }
 0x121   :  { %v300_v46 = vadd.f32 1.0, %v561_v44 }
 0x123   :  { %v301_v47 = vmul.f32 %v300_v46, %v297_v45 }
 0x125   :  { %548 = vmatmul.mubr.f32.vlgmr.msra.gmra.mxu0 %v301_v47 }
 0x19d   :  { %v293_v55 = vpop.xlane.xlu0 %292 }
 0x19e   :  { %v294_v56 = vmax.f32 %v293_v55, 1e-24 }
 0x1a0   :  { %562 = vrsqrt.f32 %v294_v56 }
 0x1ad   :  { %v563_v59 = vpop.eup %562 }
 0x1ae   :  { %v296_v61 = vmul.f32 %v563_v59, %v286_v39 }
 0x1e5   :  { %v388_v50 = vpop.f32.mrf.mxu0 }
 0x1e6   :  { %v389_v51 = vadd.f32 %v388_v50, %v321_v49 }
 0x1e7   :  { %v549_v52 = vpop.f32.mrf.mxu0 }
 0x1e8   :  { %v392_v53 = vmul.f32 %v389_v51, %v389_v51 }
 0x1ea   :  { %v393_v54 = vsel %vm290_vm1, %v392_v53, 0.0 }
 0x1eb   :  { %394 = vadd.xlane.f32.xlu0 %v393_v54 }
 0x274   :  { %v395_v57 = vpop.xlane.xlu0 %394 }
 0x275   :  { %v396_v58 = vmax.f32 %v395_v57, 1e-24 }
 0x277   :  { %564 = vrsqrt.f32 %v396_v58 }
 0x284   :  { %v565_v60 = vpop.eup %564 }
 0x285   :  { %v398_v41 = vmul.f32 %v565_v60, %v389_v51 }
 0x287   :  { %v401_v62 = vcombine.low %v296_v61, %v398_v41 }
 0x289   :  { %427 = vst.sshfl [vmem:[#allocation8] sm:$0x33 pattern:$0x76325410] %v401_v62 }
 0x28a   :  { %637 = shalt.err (!%p634_p5)
}
 0x28b   :  { %420 = dma.vmem_to_hbm [thread:$0]  %s418_s5, 64, %s712_s4, [#allocation4]  }
 0x28c   :  { %650 = dma.done.wait [#allocation4], 64  }
 0x28d   :  { %651 = vsyncadd [#allocation4], 4294967232 }
 0x28e   :  { %424 = vsyncpa [#allocation3], 1 }
 0x28f   :  { %425 = vsyncpa [#allocation6], 1 }
 0x290   :  { %426 = vsyncpa [#allocation4], 1 }

</bundles_post_ra>
